<compile_context>
chip_gen: v7x
topology: tpu7x:2x2x1
jax: 0.10.0
libtpu: 0.0.40
codegen_flags: <defaults>
</compile_context>

<pallas_src>
import functools

import jax
import jax.numpy as jnp
from jax.experimental import pallas as pl
from jax.experimental.pallas import tpu as pltpu


def _rmsnorm_kernel(x_ref, w_ref, o_ref, *, eps, inv_d):
    # x_ref: (tm, D) input dtype; w_ref: (1, D) weight dtype; o_ref: (tm, D).
    x = x_ref[...].astype(jnp.float32)                    # x.float()
    ssq = jnp.sum(x * x, axis=-1, keepdims=True)          # (tm, 1) XLU lane reduce
    inv = jax.lax.rsqrt(ssq * inv_d + eps)                # EUP rsqrt, 1/D folded in
    normed = (x * inv).astype(x_ref.dtype)                # .type_as(x): single cast
    # weight * normed under standard type promotion (matches torch); one store.
    o_ref[...] = (w_ref[...] * normed).astype(o_ref.dtype)


def _vmem_capacity_bytes():
    try:
        return int(pltpu.get_tpu_info().vmem_capacity_bytes)
    except Exception:
        return 64 << 20  # conservative fallback: v7x per-TC VMEM


def _pick_tm(M, D, in_itemsize, out_itemsize):
    """Pick token-tile rows from a VMEM byte budget (mem-bound kernel)."""
    if M <= 32:
        return M
    vmem = _vmem_capacity_bytes()
    # Live bytes / row: 2x-buffered x tile + 2x-buffered out tile + one f32 temp.
    per_row = D * (2 * in_itemsize + 2 * out_itemsize + 4)
    budget = min(int(0.6 * vmem), 48 << 20)        # 48 MiB cap keeps v7x comfortable
    tm_cap = max(32, budget // per_row)
    # ~8 MiB of x per block reaches ~85%+ of HBM roofline (measured on v6e).
    tm_target = max(32, (8 << 20) // max(1, D * in_itemsize))
    tm = min(tm_cap, tm_target)
    tm -= tm % 32                                  # multiple of 32: all dtype packings
    tm = max(32, tm)
    if tm >= M:
        # Prefer >= 2 grid steps: pipeline overlap + dual-TC sharding on v7x.
        half = (M // 2) - ((M // 2) % 32)
        tm = half if half >= 32 else M
    return min(tm, M)


def rms_norm(x, weight, *, eps=1e-6, tm=None):
    """x: (..., D); weight: (D,). RMSNorm with PyTorch type-promotion semantics."""
    orig_shape = x.shape
    D = orig_shape[-1]
    M = 1
    for s in orig_shape[:-1]:
        M *= s
    x2 = x.reshape(M, D)
    w2 = weight.reshape(1, D)

    # torch: weight * normed.type_as(x)  -> result follows type promotion.
    out_dtype = jnp.promote_types(x.dtype, weight.dtype)
    in_item = jnp.dtype(x.dtype).itemsize
    out_item = jnp.dtype(out_dtype).itemsize
    w_item = jnp.dtype(weight.dtype).itemsize

    if tm is None:
        tm = _pick_tm(M, D, in_item, out_item)
    tm = min(tm, M)
    grid = (pl.cdiv(M, tm),)   # ragged last block is masked by Pallas

    # Raise scoped VMEM above the 16/32 MiB defaults, with ~25% headroom,
    # never exceeding ~90% of physical capacity.
    live = tm * D * (2 * in_item + 2 * out_item + 4) + 2 * D * w_item
    vmem_limit = int(1.25 * live) + (2 << 20)
    vmem_limit = max(16 << 20, min(vmem_limit, int(0.9 * _vmem_capacity_bytes())))

    cost = pl.CostEstimate(
        flops=4 * M * D,
        transcendentals=M,
        bytes_accessed=M * D * (in_item + out_item) + D * w_item,
    )

    out = pl.pallas_call(
        functools.partial(_rmsnorm_kernel, eps=float(eps), inv_d=1.0 / float(D)),
        out_shape=jax.ShapeDtypeStruct((M, D), out_dtype),
        grid_spec=pltpu.PrefetchScalarGridSpec(
            num_scalar_prefetch=0,
            grid=grid,
            in_specs=[
                pl.BlockSpec((tm, D), lambda i: (i, 0)),   # token tile of x, lane-dense D
                pl.BlockSpec((1, D), lambda i: (0, 0)),    # weight stays resident
            ],
            out_specs=pl.BlockSpec((tm, D), lambda i: (i, 0)),
        ),
        compiler_params=pltpu.CompilerParams(
            # Independent token tiles -> megacore sharding on multi-TC chips.
            # TODO(synk): sweep pltpu.CORE_PARALLEL on v7x for guaranteed 2-TC split.
            dimension_semantics=("parallel",),
            vmem_limit_bytes=vmem_limit,
        ),
        cost_estimate=cost,
    )(x2, w2)
    return out.reshape(orig_shape[:-1] + (D,))


if __name__ == "__main__":
    eps = 1e-6
    key = jax.random.PRNGKey(0)

    def ref_rmsnorm(x, w, eps):
        # Pure-JAX reference of the PyTorch forward (incl. type promotion).
        xf = x.astype(jnp.float32)
        ms = jnp.mean(xf * xf, axis=-1, keepdims=True)
        normed = (xf * jax.lax.rsqrt(ms + eps)).astype(x.dtype)
        return w * normed

    # Case 1: f32, small shape consistent with the module (batch=2, seq=8, dim=128).
    k1, k2, k3 = jax.random.split(key, 3)
    x1 = jax.random.normal(k1, (2, 8, 128), dtype=jnp.float32)
    w1 = jnp.ones((128,), jnp.float32) + 0.01 * jax.random.normal(
        k2, (128,), jnp.float32
    )
    out1 = jax.block_until_ready(rms_norm(x1, w1, eps=eps))
    ref1 = ref_rmsnorm(x1, w1, eps)
    assert out1.shape == x1.shape and out1.dtype == jnp.float32
    assert jnp.allclose(out1, ref1, atol=1e-5, rtol=1e-5)

    # Case 2: multi-block grid with a ragged last block (M=120 rows, tm=32).
    x2 = jax.random.normal(k3, (3, 40, 256), dtype=jnp.float32)
    w2 = jnp.ones((256,), jnp.float32)
    out2 = jax.block_until_ready(rms_norm(x2, w2, eps=eps, tm=32))
    ref2 = ref_rmsnorm(x2, w2, eps)
    assert out2.shape == x2.shape
    assert jnp.allclose(out2, ref2, atol=1e-5, rtol=1e-5)

    # Case 3: bf16 activations, f32 weight (PyTorch promotes the result to f32).
    xb = x1.astype(jnp.bfloat16)
    outb = jax.block_until_ready(rms_norm(xb, w1, eps=eps))
    refb = ref_rmsnorm(xb, w1, eps)
    assert outb.dtype == jnp.float32
    assert jnp.allclose(outb, refb.astype(jnp.float32), atol=2e-2, rtol=2e-2)

    print("KERNEL_OK")
</pallas_src>

<mosaic_0001>
module attributes {stable_mosaic.version = 11 : i64} {
  func.func @_rmsnorm_kernel(%arg0: i32, %arg1: memref<16x128xf32, #tpu.memory_space<vmem>>, %arg2: memref<1x128xf32, #tpu.memory_space<vmem>>, %arg3: memref<16x128xf32, #tpu.memory_space<vmem>>) attributes {dimension_semantics = [#tpu.dimension_semantics<parallel>], iteration_bounds = array<i64: 1>, scalar_prefetch = 0 : i64, scratch_operands = 0 : i64, tpu.core_type = #tpu.core_type<tc>, window_params = [{transform_indices = @transform_0, window_bounds = array<i64: 16, 128>}, {pipeline_mode = #tpu.pipeline_mode<synchronous>, transform_indices = @transform_1, window_bounds = array<i64: 1, 128>}, {transform_indices = @transform_2, window_bounds = array<i64: 16, 128>}]} {
    %c0 = arith.constant 0 : index
    %c0_0 = arith.constant 0 : index
    %0 = vector.load %arg1[%c0, %c0_0] : memref<16x128xf32, #tpu.memory_space<vmem>>, vector<16x128xf32>
    %1 = arith.mulf %0, %0 : vector<16x128xf32>
    %cst = arith.constant dense<0.000000e+00> : vector<16xf32>
    %2 = vector.multi_reduction <add>, %1, %cst [1] : vector<16x128xf32> to vector<16xf32>
    %3 = vector.shape_cast %2 : vector<16xf32> to vector<16x1xf32>
    %cst_1 = arith.constant 7.812500e-03 : f32
    %4 = vector.broadcast %cst_1 : f32 to vector<16x1xf32>
    %5 = arith.mulf %3, %4 : vector<16x1xf32>
    %cst_2 = arith.constant 9.99999997E-7 : f32
    %6 = vector.broadcast %cst_2 : f32 to vector<16x1xf32>
    %7 = arith.addf %5, %6 : vector<16x1xf32>
    %8 = math.rsqrt %7 : vector<16x1xf32>
    %9 = vector.broadcast %8 : vector<16x1xf32> to vector<16x128xf32>
    %10 = arith.mulf %0, %9 : vector<16x128xf32>
    %c0_3 = arith.constant 0 : index
    %c0_4 = arith.constant 0 : index
    %11 = vector.load %arg2[%c0_3, %c0_4] : memref<1x128xf32, #tpu.memory_space<vmem>>, vector<1x128xf32>
    %12 = vector.broadcast %11 : vector<1x128xf32> to vector<16x128xf32>
    %13 = arith.mulf %12, %10 : vector<16x128xf32>
    %c0_5 = arith.constant 0 : index
    %c0_6 = arith.constant 0 : index
    %14 = vector.load %arg3[%c0_5, %c0_6] : memref<16x128xf32, #tpu.memory_space<vmem>>, vector<16x128xf32>
    tpu.vector_store %arg3[%c0_5, %c0_6], %13 {strides = array<i32>} : memref<16x128xf32, #tpu.memory_space<vmem>>, vector<16x128xf32>,
    return
  }
  func.func @transform_0(%arg0: i32) -> (i32, i32) {
    %c0_i32 = arith.constant 0 : i32
    %c0_i32_0 = arith.constant 0 : i32
    return %arg0, %c0_i32 : i32, i32
  }
  func.func @transform_1(%arg0: i32) -> (i32, i32) {
    %c0_i32 = arith.constant 0 : i32
    %c0_i32_0 = arith.constant 0 : i32
    %c0_i32_1 = arith.constant 0 : i32
    return %c0_i32, %c0_i32_0 : i32, i32
  }
  func.func @transform_2(%arg0: i32) -> (i32, i32) {
    %c0_i32 = arith.constant 0 : i32
    %c0_i32_0 = arith.constant 0 : i32
    return %arg0, %c0_i32 : i32, i32
  }
}

</mosaic_0001>

<bundles_post_ra>
// kernel: tpu_custom_call.1
= control target key start
LH: loop header
LB: loop body
LE: loop exit
PB: predicated region body
PF: predicated region fallthrough
CT: control target
= control target key end

     0   :  { %7 = vsyncpa [#allocation3], 0  ;;  %s179_s0 = inlined_call_operand.hbm [shape: f32[16,128], index: 0, kind: input, shape index: {}]   ;;  %s180_s1 = inlined_call_operand.vmem [shape: f32[1,128], index: 1, kind: input, shape index: {}]   ;;  %s181_s2 = inlined_call_operand.hbm [shape: f32[16,128], index: 2, kind: output, shape index: {}]  }
   0x1   :  { %8 = vsyncpa [#allocation4], 0  ;;  %s127_s9 = smov [#allocation2]   ;;  %s79_s13 = scalar_lea.hbm %s179_s0, 256 }
   0x2   :  { %s14_s10 = sshll.u32 %s127_s9, 4  ;;  %p80_p0 = scmp.ne.s32.totalorder %s179_s0, %s79_s13  ;;  %s15_s10 = int_to_ptr.vmem [resolvable:$true] %s14_s10 }
   0x3   :  { %p83_p1 = scmp.lt.u32.totalorder %s79_s13, %s179_s0 }
   0x5   :  { %p85_p2 = pnand %p83_p1, %p80_p0 }
   0x7   :  { %88 = shalt.err (!%p85_p2)
}
   0x8   :  { %s89_s18 = scalar_lea.vmem %s15_s10, 256  ;;  %p94_p4 = scmp.lt.s32.totalorder %s15_s10, %s15_s10 }
   0x9   :  { %p90_p3 = scmp.ne.s32.totalorder %s15_s10, %s89_s18  ;;  %p95_p5 = scmp.lt.s32.totalorder %s89_s18, %s89_s18 }
   0xb   :  { %p96_p6 = por %p95_p5, %p94_p4 }
   0xd   :  { %p97_p7 = pnand %p96_p6, %p90_p3 }
   0xf   :  { %100 = shalt.err (!%p97_p7)
}
  0x10   :  { %s128_s19 = smov 128   ;;  %s129_s20 = smov 8  }
  0x11   :  { %20 = dma.hbm_to_vmem [thread:$0]  %s179_s0, 256, %s15_s10, [#allocation3], %s128_s19, %s128_s19, %s129_s20  }
  0x12   :  { %123 = dma.done.wait [#allocation3], 256  }
  0x13   :  { %124 = vsyncadd [#allocation3], 4294967040  ;;  %v26_v0 = vld [vmem:[#allocation2] sm:$0xff]  ;;  %v27_v1 = vld [vmem:[#allocation2 + $0x8] sm:$0xff]  ;;  %s130_s0 = smov [#allocation5]  }
  0x14   :  { %v28_v2 = vmul.f32 %v26_v0, %v26_v0  ;;  %v29_v3 = vmul.f32 %v27_v1, %v27_v1  ;;  %v70_v11 = vld [vmem:[%s180_s1] ss:$0 sm:$0xff]  ;;  %s58_s25 = sshll.u32 %s130_s0, 4  ;;  %s59_s25 = int_to_ptr.vmem [resolvable:$true] %s58_s25 }
  0x15   :  { %s101_s26 = scalar_lea.vmem %s59_s25, 256  ;;  %p106_p9 = scmp.lt.s32.totalorder %s59_s25, %s59_s25 }
  0x16   :  { %30 = vadd.xlane.f32.xlu0 %v28_v2  ;;  %p102_p8 = scmp.ne.s32.totalorder %s59_s25, %s101_s26  ;;  %p107_p10 = scmp.lt.s32.totalorder %s101_s26, %s101_s26 }
  0x18   :  { %p108_p11 = por %p107_p10, %p106_p9 }
  0x1a   :  { %32 = vadd.xlane.f32.xlu0 %v29_v3  ;;  %p109_p12 = pnand %p108_p11, %p102_p8 }
  0xa3   :  { %v31_v4 = vpop.xlane.xlu0 %30 }
  0xa4   :  { %v34_v5 = vmul.f32 0.0078125, %v31_v4 }
  0xa6   :  { %v36_v6 = vadd.f32 1e-06, %v34_v5 }
  0xa7   :  { %v33_v7 = vpop.xlane.xlu0 %32 }
  0xa8   :  { %75 = vrsqrt.f32 %v36_v6  ;;  %v35_v8 = vmul.f32 0.0078125, %v33_v7 }
  0xaa   :  { %v37_v9 = vadd.f32 1e-06, %v35_v8 }
  0xac   :  { %77 = vrsqrt.f32 %v37_v9 }
  0xb2   :  { %v76_v10 = vpop.eup %75 }
  0xb3   :  { %v40_v12 = vmul.f32 %v76_v10, %v26_v0 }
  0xb5   :  { %v49_v13 = vmul.f32 %v70_v11, %v40_v12 }
  0xb6   :  { %v78_v14 = vpop.eup %77 }
  0xb7   :  { %v41_v15 = vmul.f32 %v78_v14, %v27_v1  ;;  %51 = vst [vmem:[#allocation5] sm:$0xff] %v49_v13 }
  0xb9   :  { %v50_v16 = vmul.f32 %v70_v11, %v41_v15 }
  0xbb   :  { %52 = vst [vmem:[#allocation5 + $0x8] sm:$0xff] %v50_v16 }
  0xbc   :  { %112 = shalt.err (!%p109_p12)
}
  0xbd   :  { %s113_s1 = scalar_lea.hbm %s181_s2, 256 }
  0xbe   :  { %p114_p13 = scmp.ne.s32.totalorder %s181_s2, %s113_s1  ;;  %p117_p0 = scmp.lt.u32.totalorder %s113_s1, %s181_s2 }
  0xc0   :  { %p119_p1 = pnand %p117_p0, %p114_p13 }
  0xc2   :  { %122 = shalt.err (!%p119_p1)
}
  0xc3   :  { %64 = dma.vmem_to_hbm [thread:$0]  %s59_s25, 256, %s181_s2, [#allocation4], %s128_s19, %s128_s19, %s129_s20  }
  0xc4   :  { %125 = dma.done.wait [#allocation4], 256  }
  0xc5   :  { %126 = vsyncadd [#allocation4], 4294967040 }
  0xc6   :  { %68 = vsyncpa [#allocation3], 1 }
  0xc7   :  { %69 = vsyncpa [#allocation4], 1 }

</bundles_post_ra>
